<compile_context>
chip_gen: v7x
topology: tpu7x:2x2x1
jax: 0.10.0
libtpu: 0.0.40
codegen_flags: <defaults>
</compile_context>

<pallas_src>
import functools

import jax
import jax.numpy as jnp
from jax.experimental import pallas as pl
from jax.experimental.pallas import tpu as pltpu


def _round_up(x, m):
    return (x + m - 1) // m * m


def _linear_kernel(x_ref, w_ref, b_ref, o_ref, acc_ref):
    # x_ref: (B, tk)  w_ref: (tk, tn)  b_ref: (1, tn) f32  o_ref: (B, tn)
    # acc_ref: (B, tn) f32 scratch, persistent across the K (reduction) axis.
    kk = pl.program_id(1)

    @pl.when(kk == 0)
    def _():
        acc_ref[...] = jnp.zeros_like(acc_ref)

    acc_ref[...] += jnp.dot(x_ref[...], w_ref[...],
                            preferred_element_type=jnp.float32)

    @pl.when(kk == pl.num_programs(1) - 1)
    def _():
        o_ref[...] = (acc_ref[...] + b_ref[...]).astype(o_ref.dtype)


@functools.partial(jax.jit, static_argnames=("tn", "tk", "compute_dtype"))
def empty_encoder_forward(x, w, b, *, tn=512, tk=512,
                          compute_dtype=jnp.bfloat16):
    """Pallas implementation of EmptyEncoder.forward.

    x: (B, C, H, W) float32
    w: (K, N) float32 with K = C*H*W   (transpose of torch Linear weight)
    b: (N,)   float32
    returns: (B, N) float32
    """
    batch = x.shape[0]
    x_flat = x.reshape(batch, -1)            # same as x.view(B, -1)
    k, n = w.shape
    assert x_flat.shape[1] == k

    # Pad K and N to tile multiples so output stores stay lane-dense and the
    # grid is exact; zero padding along K contributes nothing to the dot.
    k_pad = _round_up(k, tk)
    n_pad = _round_up(n, tn)

    x_c = x_flat.astype(compute_dtype)
    w_c = w.astype(compute_dtype)
    if k_pad != k:
        x_c = jnp.pad(x_c, ((0, 0), (0, k_pad - k)))
        w_c = jnp.pad(w_c, ((0, k_pad - k), (0, 0)))
    if n_pad != n:
        w_c = jnp.pad(w_c, ((0, 0), (0, n_pad - n)))
        b_p = jnp.pad(b, ((0, n_pad - n),))
    else:
        b_p = b
    b2 = b_p.reshape(1, n_pad).astype(jnp.float32)

    itemsize = jnp.dtype(compute_dtype).itemsize
    cost = pl.CostEstimate(
        flops=2 * batch * k_pad * n_pad,
        transcendentals=0,
        bytes_accessed=(k_pad * n_pad * itemsize        # stream W
                        + batch * k_pad * itemsize      # x
                        + batch * n_pad * 4             # out
                        + n_pad * 4),                   # bias
    )

    out = pl.pallas_call(
        _linear_kernel,
        out_shape=jax.ShapeDtypeStruct((batch, n_pad), jnp.float32),
        grid_spec=pltpu.PrefetchScalarGridSpec(
            num_scalar_prefetch=0,
            grid=(n_pad // tn, k_pad // tk),            # N parallel, K reduction (last)
            in_specs=[
                pl.BlockSpec((batch, tk), lambda j, kk: (0, kk)),   # x K-slab
                pl.BlockSpec((tk, tn), lambda j, kk: (kk, j)),      # W tile
                pl.BlockSpec((1, tn), lambda j, kk: (0, j)),        # bias tile
            ],
            out_specs=pl.BlockSpec((batch, tn), lambda j, kk: (0, j)),
            scratch_shapes=[pltpu.VMEM((batch, tn), jnp.float32)],
        ),
        compiler_params=pltpu.CompilerParams(
            dimension_semantics=("parallel", "arbitrary"),
            vmem_limit_bytes=64 * 1024 * 1024,
        ),
        cost_estimate=cost,
    )(x_c, w_c, b2)

    if n_pad != n:
        out = out[:, :n]
    return out


def init_linear_params(key, in_features, out_features, dtype=jnp.float32):
    """Deterministic nn.Linear-style init: U(-1/sqrt(in), 1/sqrt(in))."""
    kw, kb = jax.random.split(key)
    bound = 1.0 / (in_features ** 0.5)
    w = jax.random.uniform(kw, (in_features, out_features), dtype,
                           minval=-bound, maxval=bound)
    b = jax.random.uniform(kb, (out_features,), dtype,
                           minval=-bound, maxval=bound)
    return w, b


if __name__ == "__main__":
    key = jax.random.PRNGKey(0)
    kx, kp = jax.random.split(key)

    # Small shapes consistent with the module: NCHW input, K = 4*16*16 = 1024.
    B, C, H, W = 2, 4, 16, 16
    OUTPUT_DIM = 1024  # module default

    x = jax.random.normal(kx, (B, C, H, W), dtype=jnp.float32)
    w, b = init_linear_params(kp, C * H * W, OUTPUT_DIM)

    y = empty_encoder_forward(x, w, b)
    jax.block_until_ready(y)

    # Reference in plain JAX, using the same bf16-rounded operands the kernel
    # streams (accumulation stays f32 in both paths).
    x_bf = x.reshape(B, -1).astype(jnp.bfloat16).astype(jnp.float32)
    w_bf = w.astype(jnp.bfloat16).astype(jnp.float32)
    y_ref = x_bf @ w_bf + b

    assert y.shape == (B, OUTPUT_DIM)
    assert jnp.allclose(y, y_ref, atol=1e-2, rtol=1e-2)

    print("KERNEL_OK")
</pallas_src>

<mosaic_0001>
module attributes {stable_mosaic.version = 11 : i64} {
  func.func @_linear_kernel(%arg0: i32, %arg1: i32, %arg2: memref<2x512xbf16, #tpu.memory_space<vmem>>, %arg3: memref<512x512xbf16, #tpu.memory_space<vmem>>, %arg4: memref<1x512xf32, #tpu.memory_space<vmem>>, %arg5: memref<2x512xf32, #tpu.memory_space<vmem>>, %arg6: memref<2x512xf32, #tpu.memory_space<vmem>>) attributes {dimension_semantics = [#tpu.dimension_semantics<parallel>, #tpu.dimension_semantics<arbitrary>], iteration_bounds = array<i64: 2, 2>, scalar_prefetch = 0 : i64, scratch_operands = 1 : i64, tpu.core_type = #tpu.core_type<tc>, window_params = [{transform_indices = @transform_0, window_bounds = array<i64: 2, 512>}, {transform_indices = @transform_1, window_bounds = array<i64: 512, 512>}, {transform_indices = @transform_2, window_bounds = array<i64: 1, 512>}, {transform_indices = @transform_3, window_bounds = array<i64: 2, 512>}]} {
    %c0_i32 = arith.constant 0 : i32
    %0 = arith.cmpi eq, %arg1, %c0_i32 : i32
    %1 = arith.extui %0 : i1 to i32
    %c0_i32_0 = arith.constant 0 : i32
    %2 = arith.cmpi ne, %1, %c0_i32_0 : i32
    scf.if %2 {
      %cst_9 = arith.constant 0.000000e+00 : f32
      %12 = vector.broadcast %cst_9 : f32 to vector<2x512xf32>
      %c0_10 = arith.constant 0 : index
      %c0_11 = arith.constant 0 : index
      %13 = vector.load %arg6[%c0_10, %c0_11] : memref<2x512xf32, #tpu.memory_space<vmem>>, vector<2x512xf32>
      tpu.vector_store %arg6[%c0_10, %c0_11], %12 {strides = array<i32>} : memref<2x512xf32, #tpu.memory_space<vmem>>, vector<2x512xf32>,
    } else {
    }
    %c0 = arith.constant 0 : index
    %c0_1 = arith.constant 0 : index
    %3 = vector.load %arg6[%c0, %c0_1] : memref<2x512xf32, #tpu.memory_space<vmem>>, vector<2x512xf32>
    %c0_2 = arith.constant 0 : index
    %c0_3 = arith.constant 0 : index
    %4 = vector.load %arg2[%c0_2, %c0_3] : memref<2x512xbf16, #tpu.memory_space<vmem>>, vector<2x512xbf16>
    %c0_4 = arith.constant 0 : index
    %c0_5 = arith.constant 0 : index
    %5 = vector.load %arg3[%c0_4, %c0_5] : memref<512x512xbf16, #tpu.memory_space<vmem>>, vector<512x512xbf16>
    %cst = arith.constant dense<0.000000e+00> : vector<2x512xf32>
    %6 = tpu.matmul %4, %5, %cst {dimension_numbers = #tpu.dot_dimension_numbers<[1], [0], [0], [1], [0, 0, 1, 1], [], []>} : vector<2x512xbf16>, vector<512x512xbf16>, vector<2x512xf32> -> vector<2x512xf32>
    %7 = arith.addf %3, %6 : vector<2x512xf32>
    %c0_6 = arith.constant 0 : index
    %c0_7 = arith.constant 0 : index
    %8 = vector.load %arg6[%c0_6, %c0_7] : memref<2x512xf32, #tpu.memory_space<vmem>>, vector<2x512xf32>
    tpu.vector_store %arg6[%c0_6, %c0_7], %7 {strides = array<i32>} : memref<2x512xf32, #tpu.memory_space<vmem>>, vector<2x512xf32>,
    %c1_i32 = arith.constant 1 : i32
    %9 = arith.cmpi eq, %arg1, %c1_i32 : i32
    %10 = arith.extui %9 : i1 to i32
    %c0_i32_8 = arith.constant 0 : i32
    %11 = arith.cmpi ne, %10, %c0_i32_8 : i32
    scf.if %11 {
      %c0_9 = arith.constant 0 : index
      %c0_10 = arith.constant 0 : index
      %12 = vector.load %arg6[%c0_9, %c0_10] : memref<2x512xf32, #tpu.memory_space<vmem>>, vector<2x512xf32>
      %c0_11 = arith.constant 0 : index
      %c0_12 = arith.constant 0 : index
      %13 = vector.load %arg4[%c0_11, %c0_12] : memref<1x512xf32, #tpu.memory_space<vmem>>, vector<1x512xf32>
      %14 = vector.broadcast %13 : vector<1x512xf32> to vector<2x512xf32>
      %15 = arith.addf %12, %14 : vector<2x512xf32>
      %c0_13 = arith.constant 0 : index
      %c0_14 = arith.constant 0 : index
      %16 = vector.load %arg5[%c0_13, %c0_14] : memref<2x512xf32, #tpu.memory_space<vmem>>, vector<2x512xf32>
      tpu.vector_store %arg5[%c0_13, %c0_14], %15 {strides = array<i32>} : memref<2x512xf32, #tpu.memory_space<vmem>>, vector<2x512xf32>,
    } else {
    }
    return
  }
  func.func @transform_0(%arg0: i32, %arg1: i32) -> (i32, i32) {
    %c0_i32 = arith.constant 0 : i32
    %c0_i32_0 = arith.constant 0 : i32
    return %c0_i32, %arg1 : i32, i32
  }
  func.func @transform_1(%arg0: i32, %arg1: i32) -> (i32, i32) {
    %c0_i32 = arith.constant 0 : i32
    return %arg1, %arg0 : i32, i32
  }
  func.func @transform_2(%arg0: i32, %arg1: i32) -> (i32, i32) {
    %c0_i32 = arith.constant 0 : i32
    %c0_i32_0 = arith.constant 0 : i32
    return %c0_i32, %arg0 : i32, i32
  }
  func.func @transform_3(%arg0: i32, %arg1: i32) -> (i32, i32) {
    %c0_i32 = arith.constant 0 : i32
    %c0_i32_0 = arith.constant 0 : i32
    return %c0_i32, %arg0 : i32, i32
  }
}

</mosaic_0001>

<bundles_post_ra>
// kernel: empty_encoder_forward.1
= control target key start
LH: loop header
LB: loop body
LE: loop exit
PB: predicated region body
PF: predicated region fallthrough
CT: control target
= control target key end

     0   :  { %s2791_s0 = inlined_call_operand.hbm [shape: bf16[2,1024], index: 0, kind: input, shape index: {}]   ;;  %s2792_s1 = inlined_call_operand.hbm [shape: bf16[1024,1024], index: 1, kind: input, shape index: {}]   ;;  %s2793_s2 = inlined_call_operand.hbm [shape: f32[1,1024], index: 2, kind: input, shape index: {}]   ;;  %s2794_s3 = inlined_call_operand.hbm [shape: f32[2,1024], index: 3, kind: output, shape index: {}]  }
   0x1   :  { %2807 = sst [smem:[#allocation20_spill]] %s2791_s0 }
   0x2   :  { %2808 = sst [smem:[#allocation21_spill]] %s2792_s1 }
   0x3   :  { %2809 = sst [smem:[#allocation22_spill]] %s2794_s3 }
   0x4   :  { %8 = vsyncpa [#allocation4], 0 }
   0x5   :  { %10 = vsyncpa [#allocation4 + $0x1], 0 }
   0x6   :  { %11 = vsyncpa [#allocation7], 0 }
   0x7   :  { %13 = vsyncpa [#allocation7 + $0x1], 0 }
   0x8   :  { %14 = vsyncpa [#allocation5], 0 }
   0x9   :  { %16 = vsyncpa [#allocation5 + $0x1], 0  ;;  %s2239_s12 = smov 0   ;;  %s2241_s13 = smov 0  }
   0xa   :  { %s2243_s14 = smov 0   ;;  %s2245_s15 = smov 0  }
   0xb   :  { %s2247_s16 = smov 0   ;;  %s2249_s17 = smov 0  }
   0xc   :  { %s2251_s18 = smov 0   ;;  %s2253_s19 = smov 0  }
   0xd   :  { %s2255_s20 = smov 0   ;;  %s2257_s21 = smov 0  }
   0xe   :  { %s2259_s22 = smov 0   ;;  %s2261_s23 = smov 0  }
   0xf   :  { %s2263_s24 = smov 0   ;;  %s2265_s25 = smov 0  }
  0x10 LB: > { %2810 = sst [smem:[#allocation14_spill]] %s2187_s20  ;;  %p2796_p0 = scmp.eq.s32.totalorder %s2207_s25, 0  ;;  %s2207_s25 = sphi %s2265_s25, %s22_s25   ;;  %s2203_s24 = sphi %s2263_s24, %s2851_s24   ;;  %s2199_s23 = sphi %s2261_s23, %s2861_s23   ;;  %s2195_s22 = sphi %s2259_s22, %s2849_s22   ;;  %s2191_s21 = sphi %s2257_s21, %s2860_s21   ;;  %s2187_s20 = sphi %s2255_s20, %s2848_s20   ;;  %s2183_s19 = sphi %s2253_s19, %s2859_s19   ;;  %s2179_s18 = sphi %s2251_s18, %s2858_s18   ;;  %s2175_s17 = sphi %s2249_s17, %s2857_s17   ;;  %s2171_s16 = sphi %s2247_s16, %s2856_s16   ;;  %s2167_s15 = sphi %s2245_s15, %s2855_s15   ;;  %s2163_s14 = sphi %s2243_s14, %s2854_s14   ;;  %s2159_s13 = sphi %s2241_s13, %s2853_s13   ;;  %s2155_s12 = sphi %s2239_s12, %s2852_s12  }
  0x11   : > { %2811 = sst [smem:[#allocation15_spill]] %s2195_s22  ;;  %p76_p1 = scmp.ne.s32.totalorder %s2175_s17, %s2171_s16 }
  0x12   : > { %2812 = sst [smem:[#allocation16_spill]] %s2203_s24  ;;  %p2795_p4 = scmp.lt.s32.totalorder %s2207_s25, 4 }
  0x13   : > { %p78_p3 = por %p76_p1, %p2796_p0  ;;  %s177_s28 = sand.u32 1, %s2207_s25  }
  0x14   : > { %s179_s29 = sand.u32 1, %s2175_s17   ;;  %s1470_s4 = sshll.u32 %s2203_s24, 2 }
  0x15   : > { %s1468_s30 = sshll.u32 %s179_s29, 10  ;;  %s1618_s5 = sshll.u32 %s2199_s23, 9 }
  0x16   : > { %s181_s6 = scalar_lea.vmem [#allocation6], %s1468_s30  ;;  %s188_s8 = sadd.s32 %s1618_s5, %s1470_s4 }
  0x17   : > { %s191_s7 = sshll.u32 %s181_s6, 4  ;;  %s1472_s9 = sshll.u32 %s188_s8, 6  ;;  %s2323_s7 = int_to_ptr.vmem [resolvable:$true] %s191_s7 }
  0x18   : > { %p2327_p5 = pnand %p2795_p4, %p78_p3  ;;  %s2814_s1 = sld [smem:[#allocation21_spill]] }
  0x19   : > { %p1476_p6 = scmp.ge.s32.totalorder %s2207_s25, 1  ;;  %s2337_s29 = scalar_lea.sflag [#allocation7], %s177_s28 }
  0x1a   : > { %p1965_p8 = pneg %p2327_p5 }
  0x1e   : > { %s2334_s26 = scalar_lea.hbm %s2814_s1, %s1472_s9  ;;  %s1968_s5 = scalar_lea.hbm %s2814_s1, 65536 }
  0x1f   : > { %s1963_s30 = scalar_lea.hbm %s2334_s26, 16384  ;;  %p1969_p11 = scmp.lt.u32.totalorder %s2334_s26, %s2814_s1 }
  0x20   : > { %p1964_p7 = scmp.ne.s32.totalorder %s2334_s26, %s1963_s30  ;;  %p1970_p12 = scmp.lt.u32.totalorder %s1968_s5, %s1963_s30 }
  0x21   : > { %p1972_p1 = scmp.lt.u32.totalorder %s1963_s30, %s2334_s26 }
  0x22   : > { %p1966_p9 = pnand %p1965_p8, %p1964_p7  ;;  %p1971_p13 = por %p1970_p12, %p1969_p11 }
  0x24   : > { %p1967_p10 = pneg %p1966_p9  ;;  %p1973_p3 = por %p1972_p1, %p1971_p13 }
  0x26   : > { %p1974_p4 = pnand %p1973_p3, %p1967_p10 }
  0x28   : > { %1977 = shalt.err (!%p1974_p4)
}
  0x29   : > { %s1978_s28 = scalar_lea.vmem %s2323_s7, 16384  ;;  %s2209_s9 = smov [#allocation6]  }
  0x2a   : > { %p1979_p7 = scmp.ne.s32.totalorder %s2323_s7, %s1978_s28  ;;  %s1983_s11 = sshll.u32 %s2209_s9, 4  ;;  %s1984_s11 = int_to_ptr.vmem [resolvable:$false] %s1983_s11 }
  0x2b   : > { %s1985_s27 = scalar_lea.vmem %s1984_s11, 32768  ;;  %p1986_p0 = scmp.lt.s32.totalorder %s2323_s7, %s1984_s11 }
  0x2c   : > { %p1981_p9 = pnand %p1979_p7, %p1965_p8  ;;  %p1987_p11 = scmp.lt.s32.totalorder %s1985_s27, %s1978_s28 }
  0x2e   : > { %p1982_p2 = pneg %p1981_p9  ;;  %p1988_p12 = por %p1987_p11, %p1986_p0 }
  0x30   : > { %p1989_p13 = pnand %p1988_p12, %p1982_p2 }
  0x32   : > { %1992 = shalt.err (!%p1989_p13)
}
  0x33   : > { %s2210_s30 = smov 512   ;;  %s2211_s4 = smov 256  }
  0x34   : > { %s2212_s5 = smov 16   ;;  %p218_p0 = scmp.lt.s32.totalorder %s2207_s25, 5 }
  0x35   : > { %1643 = dma.hbm_to_vmem [thread:$0]  (!%p2327_p5), %s2334_s26, 16384, %s2323_s7, %s2337_s29, %s2210_s30, %s2211_s4, %s2212_s5  }
  0x36   : > { %p2368_p2 = pnand %p1476_p6, %p218_p0  ;;  %s2373_s8 = sadd.s32 4294967295, %s2207_s25  }
  0x37   : > { %s31_s28 = sadd.s32 1, %s2199_s23  ;;  %s41_s9 = sadd.s32 1, %s2187_s20 }
  0x38   : > { %s2815_s6 = scalar_select %p2368_p2, 1, 0 }
  0x39   : > { %p32_p4 = scmp.ge.s32.totalorder %s31_s28, 2  ;;  %p48_p5 = scmp.ne.s32.totalorder %s2187_s20, %s2183_s19 }
  0x3a   : > { %p54_p8 = scmp.ne.s32.totalorder %s2183_s19, %s2179_s18  ;;  %s2817_s26 = sadd.s32 1, %s2203_s24 }
  0x3b   : > { %s2863_s28 = smov (%p32_p4, %s31_s28), 0  ;;  %s2865_s26 = smov (!%p32_p4, %s2817_s26), %s2203_s24 }
  0x3c   : > { %2816 = sst [smem:[#allocation17_spill]] %s2863_s28  ;;  %s38_s7 = ssub.s32 %s2199_s23, %s2863_s28 }
  0x3d   : > { %p2818_p6 = scmp.eq.s32.totalorder %s2207_s25, 0  ;;  %p36_p1 = scmp.ge.s32.totalorder %s2865_s26, 2 }
  0x3e   : > { %p39_p3 = scmp.eq.s32.totalorder %s38_s7, 0  ;;  %p2800_p7 = scmp.eq.s32.totalorder %s2373_s8, 0 }
  0x3f   : > { %p2390_p10 = por %p2818_p6, %p48_p5  ;;  %s158_s18 = sand.u32 1, %s2187_s20  }
  0x40   : > { %s2867_s26 = smov (%p36_p1, %s2865_s26), 0  ;;  %p2403_p9 = por %p2800_p7, %p54_p8 }
  0x41   : > { %2820 = sst [smem:[#allocation18_spill]] %s2867_s26  ;;  %s2409_s30 = ssub.s32 %s2203_s24, %s2867_s26 }
  0x42   : > { %s2399_s11 = scalar_select %p39_p3, %s2187_s20, %s41_s9  }
  0x43   : > { %s2822_s27 = scalar_select %p2403_p9, 1, 0 }
  0x44   : > { %2821 = sst [smem:[#allocation19_spill]] %s2399_s11  ;;  %s66_s4 = sor.u32 %s2409_s30, %s38_s7 }
  0x45   : > { %p2823_p11 = scmp.ne.s32.totalorder %s2171_s16, %s2167_s15  ;;  %p67_p13 = scmp.eq.s32.totalorder %s66_s4, 0 }
  0x46   : > { %s1465_s1 = sshll.u32 %s158_s18, 2  ;;  %s1617_s28 = sshll.u32 %s2199_s23, 6 }
  0x47   : > { %p2417_p12 = por %p2823_p11, %p2800_p7  ;;  %s2825_s9 = sadd.s32 1, %s2175_s17 }
  0x48   : > { %s2425_s11 = scalar_select %p67_p13, %s2175_s17, %s2825_s9  }
  0x49   : > { %s2824_s5 = scalar_select %p2417_p12, 1, 0 }
  0x4a   : > { %s2826_s0 = sld [smem:[#allocation20_spill]]  ;;  %s162_s15 = scalar_lea.vmem [#allocation3], %s1465_s1 }
  0x4b   : > { %s170_s7 = sshll.u32 %s162_s15, 4  ;;  %p2827_p0 = scmp.lt.s32.totalorder %s2207_s25, 4  ;;  %s2440_s7 = int_to_ptr.vmem [resolvable:$true] %s170_s7 }
  0x4c   : > { %s159_s9 = scalar_lea.sflag [#allocation4], %s158_s18 }
  0x4d   : > { %p2436_p4 = pnand %p2827_p0, %p2390_p10 }
  0x4f   : > { %p1995_p8 = pneg %p2436_p4 }
  0x50   : > { %s2430_s22 = scalar_lea.hbm %s2826_s0, %s1617_s28  ;;  %s1998_s28 = scalar_lea.hbm %s2826_s0, 128 }
  0x51   : > { %s1993_s3 = scalar_lea.hbm %s2430_s22, 64  ;;  %p1999_p10 = scmp.lt.u32.totalorder %s2430_s22, %s2826_s0 }
  0x52   : > { %p1994_p5 = scmp.ne.s32.totalorder %s2430_s22, %s1993_s3  ;;  %p2000_p3 = scmp.lt.u32.totalorder %s1998_s28, %s1993_s3 }
  0x53   : > { %p2002_p13 = scmp.lt.u32.totalorder %s1993_s3, %s2430_s22 }
  0x54   : > { %p1996_p6 = pnand %p1995_p8, %p1994_p5  ;;  %p2001_p11 = por %p2000_p3, %p1999_p10 }
  0x56   : > { %p1997_p1 = pneg %p1996_p6  ;;  %p2003_p0 = por %p2002_p13, %p2001_p11 }
  0x58   : > { %p2004_p7 = pnand %p2003_p0, %p1997_p1 }
  0x5a   : > { %2007 = shalt.err (!%p2004_p7)
}
  0x5b   : > { %s2008_s18 = scalar_lea.vmem %s2440_s7, 64  ;;  %s2213_s1 = smov [#allocation3]  }
  0x5c   : > { %p2009_p5 = scmp.ne.s32.totalorder %s2440_s7, %s2008_s18  ;;  %s2013_s20 = sshll.u32 %s2213_s1, 4  ;;  %s2014_s20 = int_to_ptr.vmem [resolvable:$false] %s2013_s20 }
  0x5d   : > { %s2015_s10 = scalar_lea.vmem %s2014_s20, 128  ;;  %p2016_p9 = scmp.lt.s32.totalorder %s2440_s7, %s2014_s20 }
  0x5e   : > { %p2011_p6 = pnand %p2009_p5, %p1995_p8  ;;  %p2017_p10 = scmp.lt.s32.totalorder %s2015_s10, %s2008_s18 }
  0x60   : > { %p2012_p12 = pneg %p2011_p6  ;;  %p2018_p3 = por %p2017_p10, %p2016_p9 }
  0x62   : > { %p2019_p11 = pnand %p2018_p3, %p2012_p12 }
  0x64   : > { %2022 = shalt.err (!%p2019_p11)
}
  0x65   : > { %1640 = dma.hbm_to_vmem [thread:$0]  (!%p2436_p4), %s2430_s22, 64, %s2440_s7, %s159_s9  }
  0x66   : > { %s1462_s3 = sadd.s32 4294967294, %s2207_s25   ;;  %p93_p7 = scmp.eq.s32.totalorder %s2409_s30, 0 }
  0x67   : > { %s95_s28 = sadd.s32 1, %s2163_s14  ;;  %p102_p9 = scmp.ne.s32.totalorder %s2163_s14, %s2159_s13 }
  0x68   : > { %s2473_s4 = scalar_select %p93_p7, %s2163_s14, %s95_s28  }
  0x69   : > { %p2829_p12 = scmp.eq.s32.totalorder %s2207_s25, 0  ;;  %p108_p1 = scmp.ne.s32.totalorder %s2159_s13, %s2155_s12 }
  0x6a   : > { %p132_p13 = scmp.eq.s32.totalorder %s2373_s8, 3  ;;  %p138_p0 = scmp.eq.s32.totalorder %s1462_s3, 3 }
  0x6b   : > { %p2477_p8 = por %p102_p9, %p2829_p12  ;;  %p2831_p5 = scmp.eq.s32.totalorder %s2373_s8, 0 }
  0x6c   : > { %s203_s22 = sand.u32 1, %s2163_s14   ;;  %p2491_p4 = por %p132_p13, %p102_p9 }
  0x6d   : > { %p2486_p6 = por %p108_p1, %p2831_p5  ;;  %p2495_p10 = por %p138_p0, %p108_p1 }
  0x6e   : > { %s2833_s30 = scalar_select %p2491_p4, 1, 0 }
  0x6f   : > { %s2832_s18 = scalar_select %p2486_p6, 1, 0 }
  0x70   : > { %s2834_s7 = scalar_select %p2495_p10, 1, 0 }
  0x71   : > { %s1473_s9 = sshll.u32 %s203_s22, 2  ;;  %s1619_s1 = sshll.u32 %s2203_s24, 6 }
  0x72   : > { %s2503_s3 = scalar_lea.hbm %s2793_s2, %s1619_s1  ;;  %s205_s28 = scalar_lea.vmem [#allocation8], %s1473_s9 }
  0x73   : > { %s213_s0 = sshll.u32 %s205_s28, 4  ;;  %p2835_p3 = scmp.lt.s32.totalorder %s2207_s25, 4  ;;  %s214_s0 = int_to_ptr.vmem [resolvable:$true] %s213_s0 }
  0x74   : > { %s2023_s22 = scalar_lea.hbm %s2503_s3, 64  ;;  %s2028_s15 = scalar_lea.hbm %s2793_s2, 128 }
  0x75   : > { %p2509_p11 = pnand %p2835_p3, %p2477_p8  ;;  %p2024_p7 = scmp.ne.s32.totalorder %s2503_s3, %s2023_s22 }
  0x76   : > { %p2029_p8 = scmp.lt.u32.totalorder %s2503_s3, %s2793_s2  ;;  %p2030_p13 = scmp.lt.u32.totalorder %s2028_s15, %s2023_s22 }
  0x77   : > { %p2025_p9 = pneg %p2509_p11  ;;  %p2032_p5 = scmp.lt.u32.totalorder %s2023_s22, %s2503_s3 }
  0x78   : > { %p2031_p0 = por %p2030_p13, %p2029_p8 }
  0x79   : > { %p2026_p12 = pnand %p2025_p9, %p2024_p7 }
  0x7a   : > { %p2033_p3 = por %p2032_p5, %p2031_p0 }
  0x7b   : > { %p2027_p1 = pneg %p2026_p12 }
  0x7d   : > { %p2034_p10 = pnand %p2033_p3, %p2027_p1 }
  0x7f   : > { %2037 = shalt.err (!%p2034_p10)
}
  0x80   : > { %s2038_s28 = scalar_lea.vmem %s214_s0, 64  ;;  %s2214_s24 = smov [#allocation8]  }
  0x81   : > { %p2039_p4 = scmp.ne.s32.totalorder %s214_s0, %s2038_s28  ;;  %s2043_s1 = sshll.u32 %s2214_s24, 4  ;;  %s2044_s1 = int_to_ptr.vmem [resolvable:$false] %s2043_s1 }
  0x82   : > { %s2045_s9 = scalar_lea.vmem %s2044_s1, 128  ;;  %p2046_p6 = scmp.lt.s32.totalorder %s214_s0, %s2044_s1 }
  0x83   : > { %p2041_p7 = pnand %p2039_p4, %p2025_p9  ;;  %p2047_p2 = scmp.lt.s32.totalorder %s2045_s9, %s2038_s28 }
  0x85   : > { %p2042_p12 = pneg %p2041_p7  ;;  %p2048_p8 = por %p2047_p2, %p2046_p6 }
  0x87   : > { %p2049_p13 = pnand %p2048_p8, %p2042_p12 }
  0x89   : > { %2052 = shalt.err (!%p2049_p13)
}
  0x8a   : > { %1646 = dma.hbm_to_vmem [thread:$0]  (!%p2509_p11), %s2503_s3, 64, %s214_s0, %s2337_s29  }
  0x8b   : > { %p2837_p10 = scmp.ne.s32.totalorder %s2815_s6, 0 }
  0x8c   : > { %s224_s22 = sand.u32 (!%p2837_p10), 1, %s2183_s19   ;;  %p2838_p4 = scmp.ne.s32.totalorder (!%p2837_p10), %s2822_s27, 0 }
  0x8d   : > { %222 = sbr.rel (%p2837_p10) target bundleno = 555 (0x22b), region = 32  ;;  %s2538_s15 = sshll.u32 (!%p2837_p10), %s224_s22, 2 }
  0x8e   : > { %s225_s24 = scalar_lea.sflag (!%p2837_p10), [#allocation4], %s224_s22  ;;  %s228_s20 = scalar_lea.vmem (!%p2837_p10), [#allocation3], %s2538_s15 }
  0x94   : > { %2138 = dma.done.wait (%p2838_p4), %s225_s24, 64  }
  0x95   : > { %2140 = vsyncadd (%p2838_p4), %s225_s24, 4294967232  ;;  %s233_s0 = sand.u32 1, %s2373_s8   ;;  %s235_s29 = sand.u32 1, %s2171_s16  }
  0x96   : > { %s1478_s6 = sshll.u32 %s235_s29, 10  ;;  %s234_s26 = scalar_lea.sflag [#allocation7], %s233_s0 }
  0x97   : > { %s2547_s3 = scalar_lea.vmem [#allocation6], %s1478_s6  ;;  %p2839_p2 = scmp.ne.s32.totalorder %s2824_s5, 0 }
  0x99   : > { %2142 = dma.done.wait (%p2839_p2), %s234_s26, 16384  }
  0x9a   : > { %2144 = vsyncadd (%p2839_p2), %s234_s26, 4294950912  ;;  %s2554_s10 = sand.u32 1, %s2159_s13   ;;  %p2840_p6 = scmp.ne.s32.totalorder %s2832_s18, 0 }
  0x9b   : > { %s1479_s27 = sshll.u32 %s2554_s10, 2 }
  0x9c   : > { %s2557_s28 = scalar_lea.vmem [#allocation8], %s1479_s27 }
  0x9d   : > { %2146 = dma.done.wait (%p2840_p6), %s234_s26, 64  }
  0x9e   : > { %2148 = vsyncadd (%p2840_p6), %s234_s26, 4294967232  ;;  %s1480_s8 = sshll.u32 %s2554_s10, 3  ;;  %p1481_p11 = scmp.ne.s32.totalorder %s2191_s21, 0 }
  0x9f   : > { %s2564_s1 = scalar_lea.vmem [#allocation9], %s1480_s8  ;;  %v2215_v0 = vmov (!%p1481_p11), 0.0  }
  0xa0   : > { %287 = sbr.rel (%p1481_p11) target bundleno = 167 (0xa7), region = 48  ;;  %288 = vst [vmem:[#allocation2] sm:$0xff] (!%p1481_p11), %v2215_v0 }
  0xa7 PF: > { %v1771_v1 = vld [vmem:[%s2547_s3 + $0x4] ss:$16 sps:$4 sm:$0xff]   ;;  %v1773_v2 = vld [vmem:[%s2547_s3 + $0xc] ss:$16 sps:$4 sm:$0xff]   ;;  %v1775_v3 = vld [vmem:[%s2547_s3] ss:$16 sps:$4 sm:$0xff]   ;;  %v431_v41 = vlaneseq }
  0xa8   : > { %1088 = vmatprep.subr.bf16.mxu0 %v1771_v1  ;;  %v1776_v4 = vld [vmem:[%s2547_s3 + $0x8] ss:$16 sps:$4 sm:$0xff]   ;;  %1170 = vmatprep.subr.bf16.mxu1 %v1773_v2  ;;  %v1777_v5 = vld [vmem:[%s2547_s3 + $0x24] ss:$16 sps:$4 sm:$0xff]   ;;  %v1779_v6 = vld [vmem:[%s2547_s3 + $0x2c] ss:$16 sps:$4 sm:$0xff]  }
  0xa9   : > { %1089 = vmatpush1.bf16.msra.mxu0 %v1775_v3  ;;  %1171 = vmatpush1.bf16.msra.mxu1 %v1776_v4  ;;  %v1781_v7 = vld [vmem:[%s2547_s3 + $0x20] ss:$16 sps:$4 sm:$0xff]   ;;  %v1782_v8 = vld [vmem:[%s2547_s3 + $0x28] ss:$16 sps:$4 sm:$0xff]   ;;  %v1783_v9 = vld [vmem:[%s2547_s3 + $0x44] ss:$16 sps:$4 sm:$0xff]  }
  0xaa   : > { %1090 = vmatprep.subr.bf16.mxu0 %v1777_v5  ;;  %1172 = vmatprep.subr.bf16.mxu1 %v1779_v6  ;;  %v1785_v10 = vld [vmem:[%s2547_s3 + $0x4c] ss:$16 sps:$4 sm:$0xff]   ;;  %v1787_v11 = vld [vmem:[%s2547_s3 + $0x40] ss:$16 sps:$4 sm:$0xff]   ;;  %v1788_v12 = vld [vmem:[%s2547_s3 + $0x48] ss:$16 sps:$4 sm:$0xff]  }
  0xab   : > { %v1789_v13 = vld [vmem:[%s2547_s3 + $0x64] ss:$16 sps:$4 sm:$0xff]   ;;  %v1791_v14 = vld [vmem:[%s2547_s3 + $0x6c] ss:$16 sps:$4 sm:$0xff]   ;;  %v1793_v15 = vld [vmem:[%s2547_s3 + $0x60] ss:$16 sps:$4 sm:$0xff]  }
  0xac   : > { %v1794_v16 = vld [vmem:[%s2547_s3 + $0x68] ss:$16 sps:$4 sm:$0xff]   ;;  %v1795_v17 = vld [vmem:[%s2547_s3 + $0x84] ss:$16 sps:$4 sm:$0xff]   ;;  %v1797_v18 = vld [vmem:[%s2547_s3 + $0x8c] ss:$16 sps:$4 sm:$0xff]  }
  0xad   : > { %1091 = vmatpush1.bf16.msra.mxu0 %v1781_v7  ;;  %1173 = vmatpush1.bf16.msra.mxu1 %v1782_v8  ;;  %v1799_v19 = vld [vmem:[%s2547_s3 + $0x80] ss:$16 sps:$4 sm:$0xff]   ;;  %v1800_v20 = vld [vmem:[%s2547_s3 + $0x88] ss:$16 sps:$4 sm:$0xff]   ;;  %v1801_v21 = vld [vmem:[%s2547_s3 + $0xa4] ss:$16 sps:$4 sm:$0xff]  }
  0xae   : > { %1092 = vmatprep.subr.bf16.mxu0 %v1783_v9  ;;  %1174 = vmatprep.subr.bf16.mxu1 %v1785_v10  ;;  %v1803_v22 = vld [vmem:[%s2547_s3 + $0xac] ss:$16 sps:$4 sm:$0xff]   ;;  %v1805_v23 = vld [vmem:[%s2547_s3 + $0xa0] ss:$16 sps:$4 sm:$0xff]   ;;  %v1806_v24 = vld [vmem:[%s2547_s3 + $0xa8] ss:$16 sps:$4 sm:$0xff]  }
  0xaf   : > { %v1807_v25 = vld [vmem:[%s2547_s3 + $0xc4] ss:$16 sps:$4 sm:$0xff]   ;;  %v1809_v26 = vld [vmem:[%s2547_s3 + $0xcc] ss:$16 sps:$4 sm:$0xff]   ;;  %v1811_v27 = vld [vmem:[%s2547_s3 + $0xc0] ss:$16 sps:$4 sm:$0xff]  }
  0xb0   : > { %v1812_v28 = vld [vmem:[%s2547_s3 + $0xc8] ss:$16 sps:$4 sm:$0xff]   ;;  %v1813_v29 = vld [vmem:[%s2547_s3 + $0xe4] ss:$16 sps:$4 sm:$0xff]   ;;  %v1815_v30 = vld [vmem:[%s2547_s3 + $0xec] ss:$16 sps:$4 sm:$0xff]  }
  0xb1   : > { %1093 = vmatpush1.bf16.msra.mxu0 %v1787_v11  ;;  %1175 = vmatpush1.bf16.msra.mxu1 %v1788_v12  ;;  %v1817_v31 = vld [vmem:[%s2547_s3 + $0xe0] ss:$16 sps:$4 sm:$0xff]   ;;  %v1818_v32 = vld [vmem:[%s2547_s3 + $0xe8] ss:$16 sps:$4 sm:$0xff]   ;;  %v1819_v33 = vld [vmem:[%s2547_s3 + $0x104] ss:$16 sps:$4 sm:$0xff]  }
  0xb2   : > { %1094 = vmatprep.subr.bf16.mxu0 %v1789_v13  ;;  %1176 = vmatprep.subr.bf16.mxu1 %v1791_v14  ;;  %v1821_v34 = vld [vmem:[%s2547_s3 + $0x10c] ss:$16 sps:$4 sm:$0xff]   ;;  %v1823_v35 = vld [vmem:[%s2547_s3 + $0x100] ss:$16 sps:$4 sm:$0xff]   ;;  %v1824_v36 = vld [vmem:[%s2547_s3 + $0x108] ss:$16 sps:$4 sm:$0xff]  }
  0xb3   : > { %v1825_v37 = vld [vmem:[%s2547_s3 + $0x124] ss:$16 sps:$4 sm:$0xff]   ;;  %v1827_v38 = vld [vmem:[%s2547_s3 + $0x12c] ss:$16 sps:$4 sm:$0xff]   ;;  %v2216_v39 = vmov 1966171168  }
  0xb4   : > { %v429_v40 = vunpack.c.l.s4 %v2216_v39  ;;  %v1829_v42 = vld [vmem:[%s2547_s3 + $0x120] ss:$16 sps:$4 sm:$0xff]   ;;  %v1830_v43 = vld [vmem:[%s2547_s3 + $0x128] ss:$16 sps:$4 sm:$0xff]   ;;  %v1831_v44 = vld [vmem:[%s2547_s3 + $0x144] ss:$16 sps:$4 sm:$0xff]  }
  0xb5   : > { %1095 = vmatpush1.bf16.msra.mxu0 %v1793_v15  ;;  %1177 = vmatpush1.bf16.msra.mxu1 %v1794_v16  ;;  %v1833_v45 = vld [vmem:[%s2547_s3 + $0x14c] ss:$16 sps:$4 sm:$0xff]   ;;  %v2609_v47 = vshrl.u32 %v431_v41, 7  ;;  %v1835_v48 = vld [vmem:[%s2547_s3 + $0x140] ss:$16 sps:$4 sm:$0xff]   ;;  %p1611_p9 = scmp.ne.s32.totalorder %s2191_s21, 1 }
  0xb6   : > { %1096 = vmatprep.subr.bf16.mxu0 %v1795_v17  ;;  %1178 = vmatprep.subr.bf16.mxu1 %v1797_v18  ;;  %v430_v46 = vunpack.c.0.s8 %v429_v40  ;;  %v1836_v49 = vld [vmem:[%s2547_s3 + $0x148] ss:$16 sps:$4 sm:$0xff]   ;;  %v1837_v50 = vld [vmem:[%s2547_s3 + $0x164] ss:$16 sps:$4 sm:$0xff]   ;;  %v1839_v51 = vld [vmem:[%s2547_s3 + $0x16c] ss:$16 sps:$4 sm:$0xff]  }
  0xb7   : > { %v1482_v53 = vld.sshfl [vmem:[%s228_s20] sm:$0x33 pattern:$0x75316420]  ;;  %v1841_v54 = vld [vmem:[%s2547_s3 + $0x160] ss:$16 sps:$4 sm:$0xff]  }
  0xb8   : > { %v433_v52 = vsub.s32 %v430_v46, %v2609_v47  ;;  %v1842_v55 = vld [vmem:[%s2547_s3 + $0x168] ss:$16 sps:$4 sm:$0xff]   ;;  %v427_v56 = vcombine.high %v1482_v53, %v1482_v53  ;;  %v1843_v57 = vld [vmem:[%s2547_s3 + $0x184] ss:$16 sps:$4 sm:$0xff]   ;;  %v1845_v58 = vld [vmem:[%s2547_s3 + $0x18c] ss:$16 sps:$4 sm:$0xff]  }
  0xb9   : > { %1097 = vmatpush1.bf16.msra.mxu0 %v1799_v19  ;;  %1179 = vmatpush1.bf16.msra.mxu1 %v1800_v20  ;;  %v1847_v60 = vld [vmem:[%s2547_s3 + $0x180] ss:$16 sps:$4 sm:$0xff]   ;;  %v1848_v61 = vld [vmem:[%s2547_s3 + $0x188] ss:$16 sps:$4 sm:$0xff]   ;;  %v1849_v62 = vld [vmem:[%s2547_s3 + $0x1a4] ss:$16 sps:$4 sm:$0xff]  }
  0xba   : > { %1098 = vmatprep.subr.bf16.mxu0 %v1801_v21  ;;  %1180 = vmatprep.subr.bf16.mxu1 %v1803_v22  ;;  %v441_v59 = vrot.slane %v427_v56, %v433_v52  ;;  %v1851_v63 = vld [vmem:[%s2547_s3 + $0x1ac] ss:$16 sps:$4 sm:$0xff]   ;;  %v1853_v0 = vld [vmem:[%s2547_s3 + $0x1a0] ss:$16 sps:$4 sm:$0xff]   ;;  %v1854_v1 = vld [vmem:[%s2547_s3 + $0x1a8] ss:$16 sps:$4 sm:$0xff]   ;;  %v2639_v13 = vrot.slane %v1482_v53, %v433_v52 }
  0xbb   : > { %v1855_v2 = vld [vmem:[%s2547_s3 + $0x1c4] ss:$16 sps:$4 sm:$0xff]   ;;  %v1857_v3 = vld [vmem:[%s2547_s3 + $0x1cc] ss:$16 sps:$4 sm:$0xff]   ;;  %v1859_v4 = vld [vmem:[%s2547_s3 + $0x1c0] ss:$16 sps:$4 sm:$0xff]  }
  0xbc   : > { %1120 = vmatprep.mubr.bf16.mxu0 %v441_v59  ;;  %1202 = vmatprep.mubr.bf16.mxu1 %v441_v59  ;;  %v1860_v5 = vld [vmem:[%s2547_s3 + $0x1c8] ss:$16 sps:$4 sm:$0xff]   ;;  %v1861_v6 = vld [vmem:[%s2547_s3 + $0x1e4] ss:$16 sps:$4 sm:$0xff]   ;;  %v1863_v7 = vld [vmem:[%s2547_s3 + $0x1ec] ss:$16 sps:$4 sm:$0xff]   ;;  %v443_v17 = vcombine.high %v441_v59, %v441_v59 }
  0xbd   : > { %1099 = vmatpush1.bf16.msra.mxu0 %v1805_v23  ;;  %1181 = vmatpush1.bf16.msra.mxu1 %v1806_v24  ;;  %v1865_v8 = vld [vmem:[%s2547_s3 + $0x1e0] ss:$16 sps:$4 sm:$0xff]   ;;  %v1866_v9 = vld [vmem:[%s2547_s3 + $0x1e8] ss:$16 sps:$4 sm:$0xff]   ;;  %v1869_v10 = vld [vmem:[%s2547_s3 + $0x204] ss:$16 sps:$4 sm:$0xff]  }
  0xbe   : > { %1100 = vmatprep.subr.bf16.mxu0 %v1807_v25  ;;  %1182 = vmatprep.subr.bf16.mxu1 %v1809_v26  ;;  %v1872_v11 = vld [vmem:[%s2547_s3 + $0x20c] ss:$16 sps:$4 sm:$0xff]   ;;  %v1867_v12 = vld [vmem:[%s2547_s3 + $0x200] ss:$16 sps:$4 sm:$0xff]   ;;  %v1870_v14 = vld [vmem:[%s2547_s3 + $0x208] ss:$16 sps:$4 sm:$0xff]  }
  0xbf   : > { %v1875_v15 = vld [vmem:[%s2547_s3 + $0x224] ss:$16 sps:$4 sm:$0xff]   ;;  %v1878_v16 = vld [vmem:[%s2547_s3 + $0x22c] ss:$16 sps:$4 sm:$0xff]   ;;  %v1873_v18 = vld [vmem:[%s2547_s3 + $0x220] ss:$16 sps:$4 sm:$0xff]  }
  0xc0   : > { %v1876_v19 = vld [vmem:[%s2547_s3 + $0x228] ss:$16 sps:$4 sm:$0xff]   ;;  %v1881_v20 = vld [vmem:[%s2547_s3 + $0x244] ss:$16 sps:$4 sm:$0xff]   ;;  %v1884_v21 = vld [vmem:[%s2547_s3 + $0x24c] ss:$16 sps:$4 sm:$0xff]  }
  0xc1   : > { %1101 = vmatpush1.bf16.msra.mxu0 %v1811_v27  ;;  %1183 = vmatpush1.bf16.msra.mxu1 %v1812_v28  ;;  %v1879_v22 = vld [vmem:[%s2547_s3 + $0x240] ss:$16 sps:$4 sm:$0xff]   ;;  %v1882_v23 = vld [vmem:[%s2547_s3 + $0x248] ss:$16 sps:$4 sm:$0xff]   ;;  %v1887_v24 = vld [vmem:[%s2547_s3 + $0x264] ss:$16 sps:$4 sm:$0xff]  }
  0xc2   : > { %1102 = vmatprep.subr.bf16.mxu0 %v1813_v29  ;;  %1184 = vmatprep.subr.bf16.mxu1 %v1815_v30  ;;  %v1890_v25 = vld [vmem:[%s2547_s3 + $0x26c] ss:$16 sps:$4 sm:$0xff]   ;;  %v1885_v26 = vld [vmem:[%s2547_s3 + $0x260] ss:$16 sps:$4 sm:$0xff]   ;;  %v1888_v27 = vld [vmem:[%s2547_s3 + $0x268] ss:$16 sps:$4 sm:$0xff]  }
  0xc3   : > { %v1893_v28 = vld [vmem:[%s2547_s3 + $0x284] ss:$16 sps:$4 sm:$0xff]   ;;  %v1896_v29 = vld [vmem:[%s2547_s3 + $0x28c] ss:$16 sps:$4 sm:$0xff]   ;;  %v1891_v30 = vld [vmem:[%s2547_s3 + $0x280] ss:$16 sps:$4 sm:$0xff]  }
  0xc4   : > { %v1906_v39 = vld [vmem:[%s2547_s3 + $0x2c8] ss:$16 sps:$4 sm:$0xff]   ;;  %v1911_v40 = vld [vmem:[%s2547_s3 + $0x2e4] ss:$16 sps:$4 sm:$0xff]   ;;  %v1914_v41 = vld [vmem:[%s2547_s3 + $0x2ec] ss:$16 sps:$4 sm:$0xff]  }
  0xc5   : > { %1103 = vmatpush1.bf16.msra.mxu0 %v1817_v31  ;;  %1185 = vmatpush1.bf16.msra.mxu1 %v1818_v32  ;;  %v1894_v31 = vld [vmem:[%s2547_s3 + $0x288] ss:$16 sps:$4 sm:$0xff]   ;;  %v1899_v32 = vld [vmem:[%s2547_s3 + $0x2a4] ss:$16 sps:$4 sm:$0xff]   ;;  %v1915_v46 = vld [vmem:[%s2547_s3 + $0x300] ss:$16 sps:$4 sm:$0xff]  }
  0xc6   : > { %1104 = vmatprep.subr.bf16.mxu0 %v1819_v33  ;;  %1186 = vmatprep.subr.bf16.mxu1 %v1821_v34  ;;  %v1902_v33 = vld [vmem:[%s2547_s3 + $0x2ac] ss:$16 sps:$4 sm:$0xff]   ;;  %v1897_v34 = vld [vmem:[%s2547_s3 + $0x2a0] ss:$16 sps:$4 sm:$0xff]   ;;  %v1924_v52 = vld [vmem:[%s2547_s3 + $0x328] ss:$16 sps:$4 sm:$0xff]  }
  0xc7   : > { %v1929_v53 = vld [vmem:[%s2547_s3 + $0x344] ss:$16 sps:$4 sm:$0xff]   ;;  %v1930_v56 = vld [vmem:[%s2547_s3 + $0x348] ss:$16 sps:$4 sm:$0xff]   ;;  %v1933_v59 = vld [vmem:[%s2547_s3 + $0x360] ss:$16 sps:$4 sm:$0xff]  }
  0xc9   : > { %1105 = vmatpush1.bf16.msra.mxu0 %v1823_v35  ;;  %1187 = vmatpush1.bf16.msra.mxu1 %v1824_v36  ;;  %v1900_v35 = vld [vmem:[%s2547_s3 + $0x2a8] ss:$16 sps:$4 sm:$0xff]   ;;  %v1905_v36 = vld [vmem:[%s2547_s3 + $0x2c4] ss:$16 sps:$4 sm:$0xff]  }
  0xca   : > { %1106 = vmatprep.subr.bf16.mxu0 %v1825_v37  ;;  %1188 = vmatprep.subr.bf16.mxu1 %v1827_v38  ;;  %v1908_v37 = vld [vmem:[%s2547_s3 + $0x2cc] ss:$16 sps:$4 sm:$0xff]   ;;  %v1903_v38 = vld [vmem:[%s2547_s3 + $0x2c0] ss:$16 sps:$4 sm:$0xff]  }
  0xcd   : > { %1107 = vmatpush1.bf16.msra.mxu0 %v1829_v42  ;;  %1189 = vmatpush1.bf16.msra.mxu1 %v1830_v43  ;;  %v1909_v42 = vld [vmem:[%s2547_s3 + $0x2e0] ss:$16 sps:$4 sm:$0xff]   ;;  %v1912_v43 = vld [vmem:[%s2547_s3 + $0x2e8] ss:$16 sps:$4 sm:$0xff]  }
  0xce   : > { %1108 = vmatprep.subr.bf16.mxu0 %v1831_v44  ;;  %1190 = vmatprep.subr.bf16.mxu1 %v1833_v45  ;;  %v1917_v44 = vld [vmem:[%s2547_s3 + $0x304] ss:$16 sps:$4 sm:$0xff]   ;;  %v1920_v45 = vld [vmem:[%s2547_s3 + $0x30c] ss:$16 sps:$4 sm:$0xff]  }
  0xd1   : > { %1109 = vmatpush1.bf16.msra.mxu0 %v1835_v48  ;;  %1191 = vmatpush1.bf16.msra.mxu1 %v1836_v49  ;;  %v1918_v48 = vld [vmem:[%s2547_s3 + $0x308] ss:$16 sps:$4 sm:$0xff]   ;;  %v1923_v49 = vld [vmem:[%s2547_s3 + $0x324] ss:$16 sps:$4 sm:$0xff]  }
  0xd2   : > { %1110 = vmatprep.subr.bf16.mxu0 %v1837_v50  ;;  %1192 = vmatprep.subr.bf16.mxu1 %v1839_v51  ;;  %v1926_v50 = vld [vmem:[%s2547_s3 + $0x32c] ss:$16 sps:$4 sm:$0xff]   ;;  %v1921_v51 = vld [vmem:[%s2547_s3 + $0x320] ss:$16 sps:$4 sm:$0xff]  }
  0xd5   : > { %1111 = vmatpush1.bf16.msra.mxu0 %v1841_v54  ;;  %1193 = vmatpush1.bf16.msra.mxu1 %v1842_v55  ;;  %v1932_v54 = vld [vmem:[%s2547_s3 + $0x34c] ss:$16 sps:$4 sm:$0xff]   ;;  %v1927_v55 = vld [vmem:[%s2547_s3 + $0x340] ss:$16 sps:$4 sm:$0xff]  }
  0xd6   : > { %1112 = vmatprep.subr.bf16.mxu0 %v1843_v57  ;;  %1194 = vmatprep.subr.bf16.mxu1 %v1845_v58  ;;  %v1935_v57 = vld [vmem:[%s2547_s3 + $0x364] ss:$16 sps:$4 sm:$0xff]   ;;  %v1938_v58 = vld [vmem:[%s2547_s3 + $0x36c] ss:$16 sps:$4 sm:$0xff]  }
  0xd9   : > { %1113 = vmatpush1.bf16.msra.mxu0 %v1847_v60  ;;  %1195 = vmatpush1.bf16.msra.mxu1 %v1848_v61  ;;  %v1936_v60 = vld [vmem:[%s2547_s3 + $0x368] ss:$16 sps:$4 sm:$0xff]   ;;  %v1941_v61 = vld [vmem:[%s2547_s3 + $0x384] ss:$16 sps:$4 sm:$0xff]  }
  0xda   : > { %1114 = vmatprep.subr.bf16.mxu0 %v1849_v62  ;;  %1196 = vmatprep.subr.bf16.mxu1 %v1851_v63  ;;  %v1944_v62 = vld [vmem:[%s2547_s3 + $0x38c] ss:$16 sps:$4 sm:$0xff]   ;;  %v1939_v63 = vld [vmem:[%s2547_s3 + $0x380] ss:$16 sps:$4 sm:$0xff]  }
  0xdd   : > { %1115 = vmatpush1.bf16.msra.mxu0 %v1853_v0  ;;  %1197 = vmatpush1.bf16.msra.mxu1 %v1854_v1  ;;  %v1942_v0 = vld [vmem:[%s2547_s3 + $0x388] ss:$16 sps:$4 sm:$0xff]   ;;  %v1947_v1 = vld [vmem:[%s2547_s3 + $0x3a4] ss:$16 sps:$4 sm:$0xff]  }
  0xde   : > { %1116 = vmatprep.subr.bf16.mxu0 %v1855_v2  ;;  %1198 = vmatprep.subr.bf16.mxu1 %v1857_v3  ;;  %v1950_v2 = vld [vmem:[%s2547_s3 + $0x3ac] ss:$16 sps:$4 sm:$0xff]   ;;  %v1945_v3 = vld [vmem:[%s2547_s3 + $0x3a0] ss:$16 sps:$4 sm:$0xff]  }
  0xe1   : > { %1117 = vmatpush1.bf16.msra.mxu0 %v1859_v4  ;;  %1199 = vmatpush1.bf16.msra.mxu1 %v1860_v5  ;;  %v1948_v4 = vld [vmem:[%s2547_s3 + $0x3a8] ss:$16 sps:$4 sm:$0xff]   ;;  %v1953_v5 = vld [vmem:[%s2547_s3 + $0x3c4] ss:$16 sps:$4 sm:$0xff]  }
  0xe2   : > { %1118 = vmatprep.subr.bf16.mxu0 %v1861_v6  ;;  %1200 = vmatprep.subr.bf16.mxu1 %v1863_v7  ;;  %v1956_v6 = vld [vmem:[%s2547_s3 + $0x3cc] ss:$16 sps:$4 sm:$0xff]   ;;  %v1951_v7 = vld [vmem:[%s2547_s3 + $0x3c0] ss:$16 sps:$4 sm:$0xff]  }
  0xe5   : > { %1119 = vmatpush1.bf16.msra.mxu0 %v1865_v8  ;;  %1201 = vmatpush1.bf16.msra.mxu1 %v1866_v9  ;;  %v1954_v8 = vld [vmem:[%s2547_s3 + $0x3c8] ss:$16 sps:$4 sm:$0xff]   ;;  %v1959_v9 = vld [vmem:[%s2547_s3 + $0x3e4] ss:$16 sps:$4 sm:$0xff]  }
  0xe6   : > { %1129 = vmatprep.subr.bf16.mxu0 %v1869_v10  ;;  %1211 = vmatprep.subr.bf16.mxu1 %v1872_v11  ;;  %v1962_v10 = vld [vmem:[%s2547_s3 + $0x3ec] ss:$16 sps:$4 sm:$0xff]   ;;  %v1957_v11 = vld [vmem:[%s2547_s3 + $0x3e0] ss:$16 sps:$4 sm:$0xff]  }
  0xe8   : > { %1121 = vmatmul.mubr.bf16.vlgmr.msra.gmra.mrb[0].mxu0 %v2639_v13  ;;  %1203 = vmatmul.mubr.bf16.vlgmr.msra.gmra.mrb[0].mxu1 %v2639_v13 }
  0xe9   : > { %1130 = vmatpush1.bf16.msra.mxu0 %v1867_v12  ;;  %1212 = vmatpush1.bf16.msra.mxu1 %v1870_v14  ;;  %v1960_v12 = vld [vmem:[%s2547_s3 + $0x3e8] ss:$16 sps:$4 sm:$0xff]   ;;  %v442_v14 = vcombine.high %v2639_v13, %v2639_v13 }
  0xea   : > { %1131 = vmatprep.subr.bf16.mxu0 %v1875_v15  ;;  %1213 = vmatprep.subr.bf16.mxu1 %v1878_v16  ;;  %v2217_v15 = vmov 1983009808  }
  0xeb   : > { %1161 = vmatprep.mubr.bf16.mxu0 %v443_v17  ;;  %1243 = vmatprep.mubr.bf16.mxu1 %v443_v17  ;;  %v1259_v16 = vunpack.c.l.s4 %v2217_v15 }
  0xed   : > { %1132 = vmatpush1.bf16.msra.mxu0 %v1873_v18  ;;  %1214 = vmatpush1.bf16.msra.mxu1 %v1876_v19  ;;  %v1260_v17 = vunpack.c.0.s8 %v1259_v16 }
  0xee   : > { %1133 = vmatprep.subr.bf16.mxu0 %v1881_v20  ;;  %1215 = vmatprep.subr.bf16.mxu1 %v1884_v21 }
  0xef   : > { %v1263_v20 = vsub.s32 %v1260_v17, %v2609_v47 }
  0xf1   : > { %1134 = vmatpush1.bf16.msra.mxu0 %v1879_v22  ;;  %1216 = vmatpush1.bf16.msra.mxu1 %v1882_v23 }
  0xf2   : > { %1135 = vmatprep.subr.bf16.mxu0 %v1887_v24  ;;  %1217 = vmatprep.subr.bf16.mxu1 %v1890_v25 }
  0xf5   : > { %1136 = vmatpush1.bf16.msra.mxu0 %v1885_v26  ;;  %1218 = vmatpush1.bf16.msra.mxu1 %v1888_v27 }
  0xf6   : > { %1137 = vmatprep.subr.bf16.mxu0 %v1893_v28  ;;  %1219 = vmatprep.subr.bf16.mxu1 %v1896_v29 }
  0xf9   : > { %1138 = vmatpush1.bf16.msra.mxu0 %v1891_v30  ;;  %1220 = vmatpush1.bf16.msra.mxu1 %v1894_v31  ;;  %v289_v30 = vld [vmem:[#allocation2] sm:$0xff] }
  0xfa   : > { %1139 = vmatprep.subr.bf16.mxu0 %v1899_v32  ;;  %1221 = vmatprep.subr.bf16.mxu1 %v1902_v33  ;;  %v1281_v33 = vld [vmem:[%s2557_s28] sm:$0xf] (!%p1611_p9) }
  0xfd   : > { %1140 = vmatpush1.bf16.msra.mxu0 %v1897_v34  ;;  %1222 = vmatpush1.bf16.msra.mxu1 %v1900_v35  ;;  %v1285_v34 = vsub.s32 (!%p1611_p9), 0, %v2609_v47  ;;  %v1289_v35 = vsub.s32 (!%p1611_p9), 1, %v2609_v47 }
  0xfe   : > { %1141 = vmatprep.subr.bf16.mxu0 %v1905_v36  ;;  %1223 = vmatprep.subr.bf16.mxu1 %v1908_v37  ;;  %v1293_v36 = vsub.s32 (!%p1611_p9), 2, %v2609_v47  ;;  %v1297_v37 = vsub.s32 (!%p1611_p9), 3, %v2609_v47 }
 0x101   : > { %1142 = vmatpush1.bf16.msra.mxu0 %v1903_v38  ;;  %1224 = vmatpush1.bf16.msra.mxu1 %v1906_v39  ;;  %v1286_v38 = vrot.slane (!%p1611_p9), %v1281_v33, %v1285_v34  ;;  %v1290_v39 = vrot.slane (!%p1611_p9), %v1281_v33, %v1289_v35 }
 0x102   : > { %1143 = vmatprep.subr.bf16.mxu0 %v1911_v40  ;;  %1225 = vmatprep.subr.bf16.mxu1 %v1914_v41  ;;  %v1294_v40 = vrot.slane (!%p1611_p9), %v1281_v33, %v1293_v36  ;;  %v1298_v41 = vrot.slane (!%p1611_p9), %v1281_v33, %v1297_v37 }
 0x105   : > { %1144 = vmatpush1.bf16.msra.mxu0 %v1909_v42  ;;  %1226 = vmatpush1.bf16.msra.mxu1 %v1912_v43  ;;  %v1299_v42 = vcombine.low (!%p1611_p9), %v1286_v38, %v1290_v39  ;;  %v1300_v43 = vcombine.low (!%p1611_p9), %v1294_v40, %v1298_v41 }
 0x106   : > { %1145 = vmatprep.subr.bf16.mxu0 %v1917_v44  ;;  %1227 = vmatprep.subr.bf16.mxu1 %v1920_v45 }
 0x107   : > { %v1307_v44 = vrot.slane (!%p1611_p9), %v1299_v42, %v1263_v20  ;;  %v1314_v45 = vrot.slane (!%p1611_p9), %v1300_v43, %v1263_v20 }
 0x109   : > { %1146 = vmatpush1.bf16.msra.mxu0 %v1915_v46  ;;  %1228 = vmatpush1.bf16.msra.mxu1 %v1918_v48  ;;  %v1315_v48 = vcombine.low (!%p1611_p9), %v1307_v44, %v1314_v45 }
 0x10a   : > { %1147 = vmatprep.subr.bf16.mxu0 %v1923_v49  ;;  %1229 = vmatprep.subr.bf16.mxu1 %v1926_v50 }
 0x10d   : > { %1148 = vmatpush1.bf16.msra.mxu0 %v1921_v51  ;;  %1230 = vmatpush1.bf16.msra.mxu1 %v1924_v52 }
 0x10e   : > { %1149 = vmatprep.subr.bf16.mxu0 %v1929_v53  ;;  %1231 = vmatprep.subr.bf16.mxu1 %v1932_v54 }
 0x111   : > { %1150 = vmatpush1.bf16.msra.mxu0 %v1927_v55  ;;  %1232 = vmatpush1.bf16.msra.mxu1 %v1930_v56 }
 0x112   : > { %1151 = vmatprep.subr.bf16.mxu0 %v1935_v57  ;;  %1233 = vmatprep.subr.bf16.mxu1 %v1938_v58 }
 0x115   : > { %1152 = vmatpush1.bf16.msra.mxu0 %v1933_v59  ;;  %1234 = vmatpush1.bf16.msra.mxu1 %v1936_v60 }
 0x116   : > { %1153 = vmatprep.subr.bf16.mxu0 %v1941_v61  ;;  %1235 = vmatprep.subr.bf16.mxu1 %v1944_v62 }
 0x119   : > { %1154 = vmatpush1.bf16.msra.mxu0 %v1939_v63  ;;  %1236 = vmatpush1.bf16.msra.mxu1 %v1942_v0 }
 0x11a   : > { %1155 = vmatprep.subr.bf16.mxu0 %v1947_v1  ;;  %1237 = vmatprep.subr.bf16.mxu1 %v1950_v2 }
 0x11d   : > { %1156 = vmatpush1.bf16.msra.mxu0 %v1945_v3  ;;  %1238 = vmatpush1.bf16.msra.mxu1 %v1948_v4 }
 0x11e   : > { %1157 = vmatprep.subr.bf16.mxu0 %v1953_v5  ;;  %1239 = vmatprep.subr.bf16.mxu1 %v1956_v6 }
 0x121   : > { %1158 = vmatpush1.bf16.msra.mxu0 %v1951_v7  ;;  %1240 = vmatpush1.bf16.msra.mxu1 %v1954_v8 }
 0x122   : > { %1159 = vmatprep.subr.bf16.mxu0 %v1959_v9  ;;  %1241 = vmatprep.subr.bf16.mxu1 %v1962_v10 }
 0x125   : > { %1160 = vmatpush1.bf16.msra.mxu0 %v1957_v11  ;;  %1242 = vmatpush1.bf16.msra.mxu1 %v1960_v12 }
 0x128   : > { %1162 = vmatmul.mubr.bf16.vlgmr.msra.gmra.mrb[0].mxu0 %v442_v14  ;;  %1244 = vmatmul.mubr.bf16.vlgmr.msra.gmra.mrb[0].mxu1 %v442_v14 }
 0x1fb   : > { %v1163_v18 = vpop.f32.mrb[0].mxu0  ;;  %v1245_v19 = vpop.f32.mrb[0].mxu1 }
 0x1fc   : > { %v1165_v21 = vpop.f32.mrb[1].mxu0  ;;  %v1247_v22 = vpop.f32.mrb[1].mxu1 }
 0x1fd   : > { %v1256_v23 = vcombine.low %v1163_v18, %v1165_v21  ;;  %v1257_v24 = vcombine.low %v1245_v19, %v1247_v22  ;;  %v1167_v25 = vpop.f32.mrb[2].mxu0  ;;  %v1249_v26 = vpop.f32.mrb[2].mxu1 }
 0x1fe   : > { %v1168_v27 = vpop.f32.mrb[3].mxu0  ;;  %v1250_v28 = vpop.f32.mrb[3].mxu1 }
 0x1ff   : > { %v1264_v13 = vrot.slane %v1256_v23, %v1263_v20  ;;  %v1271_v29 = vrot.slane %v1257_v24, %v1263_v20  ;;  %1279 = sbr.rel (%p1611_p9) target bundleno = 528 (0x210), region = 52 }
 0x201   : > { %v1272_v31 = vcombine.low %v1264_v13, %v1271_v29 }
 0x203   : > { %v1274_v32 = vadd.f32 %v1272_v31, %v289_v30 }
 0x205   : > { %1275 = vst [vmem:[#allocation2] sm:$0xff] %v1274_v32 }
 0x20c   : > { %v1280_v46 = vld [vmem:[#allocation2] sm:$0xff] }
 0x20d   : > { %v1317_v49 = vadd.f32 %v1315_v48, %v1280_v46 }
 0x20f   : > { %1318 = vst [vmem:[%s2564_s1] sm:$0xff] %v1317_v49 }
 0x210 PF: > { %s2841_s21 = sld [smem:[#allocation15_spill]]  ;;  %s2842_s22 = sld [smem:[#allocation22_spill]] }
 0x211   : > { %s1334_s24 = sshll.u32 %s2564_s1, 4  ;;  %s1320_s20 = scalar_lea.sflag [#allocation5], %s2554_s10  ;;  %s1335_s24 = int_to_ptr.vmem [resolvable:$true] %s1334_s24 }
 0x212   : > { %s2053_s29 = scalar_lea.vmem %s1335_s24, 128  ;;  %p2844_p0 = scmp.ne.s32.totalorder %s2833_s30, 0 }
 0x213   : > { %p2054_p1 = scmp.ne.s32.totalorder %s1335_s24, %s2053_s29  ;;  %s2218_s6 = smov [#allocation9]  }
 0x214   : > { %s2057_s26 = sshll.u32 %s2218_s6, 4  ;;  %s2058_s26 = int_to_ptr.vmem [resolvable:$false] %s2057_s26 }
 0x215   : > { %p2055_p5 = pnand %p2054_p1, %p2844_p0  ;;  %s2059_s3 = scalar_lea.vmem %s2058_s26, 256 }
 0x216   : > { %s1620_s5 = sshll.u32 %s2841_s21, 7  ;;  %s2843_s0 = smov %s2842_s22 }
 0x217   : > { %s2718_s15 = scalar_lea.hbm %s2842_s22, %s1620_s5  ;;  %p2056_p3 = pneg %p2055_p5 }
 0x218   : > { %p2060_p7 = scmp.lt.s32.totalorder %s1335_s24, %s2058_s26  ;;  %p2061_p12 = scmp.lt.s32.totalorder %s2059_s3, %s2053_s29 }
 0x21a   : > { %p2062_p8 = por %p2061_p12, %p2060_p7 }
 0x21c   : > { %p2063_p13 = pnand %p2062_p8, %p2056_p3 }
 0x21e   : > { %2066 = shalt.err (!%p2063_p13)
}
 0x21f   : > { %s2067_s10 = scalar_lea.hbm %s2718_s15, 128  ;;  %s2071_s8 = scalar_lea.hbm %s2843_s0, 256 }
 0x220   : > { %p2068_p10 = scmp.ne.s32.totalorder %s2718_s15, %s2067_s10  ;;  %p2072_p6 = scmp.lt.u32.totalorder %s2718_s15, %s2843_s0 }
 0x221   : > { %p2073_p11 = scmp.lt.u32.totalorder %s2071_s8, %s2067_s10  ;;  %p2075_p1 = scmp.lt.u32.totalorder %s2067_s10, %s2718_s15 }
 0x222   : > { %p2069_p4 = pnand %p2068_p10, %p2844_p0 }
 0x223   : > { %p2074_p9 = por %p2073_p11, %p2072_p6 }
 0x224   : > { %p2070_p2 = pneg %p2069_p4 }
 0x225   : > { %p2076_p5 = por %p2075_p1, %p2074_p9 }
 0x227   : > { %p2077_p3 = pnand %p2076_p5, %p2070_p2 }
 0x229   : > { %2080 = shalt.err (!%p2077_p3)
}
 0x22a   : > { %1635 = dma.vmem_to_hbm [thread:$0]  (%p2844_p0), %s1335_s24, 128, %s2718_s15, %s1320_s20  }
 0x22b PF: > { %p1652_p7 = scmp.ge.s32.totalorder %s2207_s25, 2  ;;  %s1346_s5 = sand.u32 1, %s2155_s12  }
 0x22c   : > { %p2845_p12 = scmp.ne.s32.totalorder %s2834_s7, 0  ;;  %s1347_s18 = scalar_lea.sflag [#allocation5], %s1346_s5 }
 0x22e   : > { %p1648_p8 = pnand %p1652_p7, %p2845_p12 }
 0x230   : > { %2150 = dma.done.wait (!%p1648_p8), %s1347_s18, 128  }
 0x231   : > { %2152 = vsyncadd (!%p1648_p8), %s1347_s18, 4294967168  ;;  %s22_s25 = sadd.s32 1, %s2207_s25   ;;  %s2847_s30 = sld [smem:[#allocation14_spill]] }
 0x232   : > { %p2744_p13 = scmp.ge.s32.totalorder %s22_s25, 6   ;;  %s2848_s20 = sld [smem:[#allocation19_spill]] }
 0x233   : > { %s2849_s22 = sld [smem:[#allocation16_spill]]  ;;  %s2850_s7 = sld [smem:[#allocation17_spill]] }
 0x234   : > { %s2851_s24 = sld [smem:[#allocation18_spill]]  ;;  %s2852_s12 = smov %s2159_s13 }
 0x235   : > { %s2853_s13 = smov %s2163_s14  ;;  %s2854_s14 = smov %s2473_s4 }
 0x236   : > { %s2855_s15 = smov %s2171_s16  ;;  %s2856_s16 = smov %s2175_s17 }
 0x237   : > { %s2857_s17 = smov %s2425_s11  ;;  %s2858_s18 = smov %s2183_s19 }
 0x238   : > { %s2859_s19 = smov %s2847_s30  ;;  %s2860_s21 = smov %s2199_s23 }
 0x239   : > { %s2861_s23 = smov %s2850_s7  ;;  %21 = sbr.rel (!%p2744_p13) target bundleno = 16 (0x10), region = 109 }
 0x240   :  { %1352 = vsyncpa [#allocation4], 1 }
 0x241   :  { %1354 = vsyncpa [#allocation4 + $0x1], 1 }
 0x242   :  { %1355 = vsyncpa [#allocation7], 1 }
 0x243   :  { %1357 = vsyncpa [#allocation7 + $0x1], 1 }
 0x244   :  { %1358 = vsyncpa [#allocation5], 1 }
 0x245   :  { %1360 = vsyncpa [#allocation5 + $0x1], 1 }

</bundles_post_ra>
